<compile_context>
chip_gen: v5e
topology: v5e:2x2
jax: 0.10.0
libtpu: 0.0.40
codegen_flags: <defaults>
</compile_context>

<pallas_src>
import functools

import jax
import jax.numpy as jnp
from jax.experimental import pallas as pl
from jax.experimental.pallas import tpu as pltpu

NEG_SLOPE = 0.01  # PyTorch nn.LeakyReLU default
LANES = 128


def actor_kernel(raw_ref, wcat_ref, b1_ref, w2_ref, b2_ref, out_ref):
    # Single (TB, F) x (F, 2H) MXU pass, bf16 operands, f32 accumulation.
    # Columns [0:H]  -> fc pre-activation (feat_proj folded into w1)
    # Columns [H:2H] -> qoe_features
    hq = jnp.dot(raw_ref[...], wcat_ref[...], preferred_element_type=jnp.float32)
    H = b1_ref.shape[1]
    h_pre = hq[:, :H] + b1_ref[...]          # static slice at a lane-tile boundary
    qoe = hq[:, H:]
    # LeakyReLU in f32 (v5e VPU has no bf16 ALU), then residual add.
    h = jnp.where(h_pre > 0, h_pre, NEG_SLOPE * h_pre) + qoe
    # out head: Linear(H -> A_pad), A zero-padded to 128 lanes -> unmasked stores.
    logits = jnp.dot(h.astype(w2_ref.dtype), w2_ref[...],
                     preferred_element_type=jnp.float32) + b2_ref[...]
    out_ref[...] = logits.astype(out_ref.dtype)   # bf16 writeback


def _pick_block_b(batch):
    """Tile heuristic: 1 tile for small batches, else >=2 parallel tiles
    (keeps both v7x TensorCores busy; costs ~0.35us extra on 1-TC chips)."""
    if batch <= 256:
        return batch                      # block == full dim, no (8,128) issue
    half = -(-batch // 2)                 # ceil(B/2)
    half = -(-half // 8) * 8              # round up to sublane multiple
    return min(half, 1024)


@functools.partial(jax.jit, static_argnames=("action_space", "block_b"))
def actor_forward(raw, w_cat, b1, w2_pad, b2_pad, *, action_space, block_b=None):
    """raw: (B, F) bf16; w_cat: (F, 2H) bf16; b1: (1, H) f32;
    w2_pad: (H, A_pad) bf16; b2_pad: (1, A_pad) f32.
    Returns logits (B, action_space) bf16."""
    B, F = raw.shape
    H = b1.shape[1]
    A_pad = w2_pad.shape[1]

    tb = _pick_block_b(B) if block_b is None else block_b
    n_blk = -(-B // tb)
    B_pad = n_blk * tb
    if B_pad != B:                        # robust to non-multiple batch sizes
        raw = jnp.pad(raw, ((0, B_pad - B), (0, 0)))

    flops = 2 * B_pad * F * (2 * H) + 2 * B_pad * H * A_pad
    bytes_accessed = (B_pad * F * 2 + F * 2 * H * 2 + H * 4
                      + H * A_pad * 2 + A_pad * 4 + B_pad * A_pad * 2)

    vmem = pltpu.MemorySpace.VMEM
    logits_pad = pl.pallas_call(
        actor_kernel,
        out_shape=jax.ShapeDtypeStruct((B_pad, A_pad), jnp.bfloat16),
        grid=(n_blk,),
        in_specs=[
            # batch-tiled activations
            pl.BlockSpec((tb, F), lambda i: (i, 0), memory_space=vmem),
            # weights / biases: constant block index -> stay VMEM-resident
            pl.BlockSpec((F, 2 * H), lambda i: (0, 0), memory_space=vmem),
            pl.BlockSpec((1, H), lambda i: (0, 0), memory_space=vmem),
            pl.BlockSpec((H, A_pad), lambda i: (0, 0), memory_space=vmem),
            pl.BlockSpec((1, A_pad), lambda i: (0, 0), memory_space=vmem),
        ],
        out_specs=pl.BlockSpec((tb, A_pad), lambda i: (i, 0), memory_space=vmem),
        compiler_params=pltpu.CompilerParams(
            dimension_semantics=("parallel",)),   # shard batch across TCs (v7x)
        cost_estimate=pl.CostEstimate(flops=flops, transcendentals=0,
                                      bytes_accessed=bytes_accessed),
    )(raw, w_cat, b1, w2_pad, b2_pad)

    # De-pad inside the same jit so the slice fuses with the consumer
    # (no standalone HBM re-read of the padded output).
    return logits_pad[:B, :action_space]


def prepare_params(feat_proj, qoe_proj, w1, b1, w2, b2, lanes=LANES):
    """Fold the linear feature_net stand-in into fc (W_eff = feat_proj @ w1,
    computed once in f32) and concatenate with qoe_proj into one lane-dense
    (F, 2H) bf16 weight; zero-pad the (H, A) head to (H, A_pad)."""
    w_eff = jnp.dot(feat_proj.astype(jnp.float32), w1.astype(jnp.float32))
    w_cat = jnp.concatenate([w_eff, qoe_proj.astype(jnp.float32)],
                            axis=1).astype(jnp.bfloat16)
    H, A = w2.shape
    A_pad = -(-A // lanes) * lanes
    w2_pad = jnp.zeros((H, A_pad), jnp.bfloat16).at[:, :A].set(
        w2.astype(jnp.bfloat16))
    b2_pad = jnp.zeros((1, A_pad), jnp.float32).at[:, :A].set(
        b2.reshape(1, A).astype(jnp.float32))
    b1 = b1.reshape(1, H).astype(jnp.float32)
    return w_cat, b1, w2_pad, b2_pad


def init_params(key, feature_dim, hidden_dim, action_space):
    k1, k2, k3, k4 = jax.random.split(key, 4)
    # Deterministic synthetic init (roughly PyTorch Linear uniform scale).
    s1 = 1.0 / feature_dim ** 0.5
    s2 = 1.0 / hidden_dim ** 0.5
    w1 = jax.random.uniform(k1, (feature_dim, hidden_dim), jnp.float32, -s1, s1)
    b1 = jax.random.uniform(k2, (1, hidden_dim), jnp.float32, -s1, s1)
    w2 = jax.random.uniform(k3, (hidden_dim, action_space), jnp.float32, -s2, s2)
    b2 = jax.random.uniform(k4, (1, action_space), jnp.float32, -s2, s2)
    return w1, b1, w2, b2


if __name__ == "__main__":
    key = jax.random.PRNGKey(0)
    batch = 512        # -> 2 parallel grid steps of 256 rows
    feature_dim = 128  # MXU / lane aligned
    hidden_dim = 128   # MXU / lane aligned
    action_space = 6   # number of bitrate levels (padded to 128 lanes)

    kf, kq, kp, kb = jax.random.split(key, 4)

    # Deterministic linear stand-in for the injected feature_net.
    raw_batch = jax.random.normal(kb, (batch, feature_dim), jnp.float32)
    feat_proj = jax.random.normal(kf, (feature_dim, feature_dim), jnp.float32) * 0.1
    qoe_proj = jax.random.normal(kq, (feature_dim, hidden_dim), jnp.float32) * 0.1

    w1, b1, w2, b2 = init_params(kp, feature_dim, hidden_dim, action_space)
    w_cat, b1_r, w2_pad, b2_pad = prepare_params(feat_proj, qoe_proj,
                                                 w1, b1, w2, b2)

    raw_bf = raw_batch.astype(jnp.bfloat16)

    logits = actor_forward(raw_bf, w_cat, b1_r, w2_pad, b2_pad,
                           action_space=action_space)
    jax.block_until_ready(logits)
    assert logits.shape == (batch, action_space)
    assert logits.dtype == jnp.bfloat16

    # Pure-JAX reference with identical numerics (folded bf16 weights, f32 MXU
    # accumulation, bf16 logits).
    H = hidden_dim
    h_pre = jnp.dot(raw_bf, w_cat[:, :H],
                    preferred_element_type=jnp.float32) + b1_r
    qoe = jnp.dot(raw_bf, w_cat[:, H:], preferred_element_type=jnp.float32)
    h = jnp.where(h_pre > 0, h_pre, NEG_SLOPE * h_pre) + qoe
    logits_ref = jnp.dot(h.astype(jnp.bfloat16), w2_pad,
                         preferred_element_type=jnp.float32) + b2_pad
    logits_ref = logits_ref[:, :action_space].astype(jnp.bfloat16)

    assert jnp.allclose(logits.astype(jnp.float32),
                        logits_ref.astype(jnp.float32),
                        atol=2e-2, rtol=2e-2), "mismatch vs reference"

    print("KERNEL_OK")
</pallas_src>

<mosaic_0001>
module attributes {stable_mosaic.version = 11 : i64} {
  func.func @actor_kernel(%arg0: i32, %arg1: memref<256x128xbf16, #tpu.memory_space<vmem>>, %arg2: memref<128x256xbf16, #tpu.memory_space<vmem>>, %arg3: memref<1x128xf32, #tpu.memory_space<vmem>>, %arg4: memref<128x128xbf16, #tpu.memory_space<vmem>>, %arg5: memref<1x128xf32, #tpu.memory_space<vmem>>, %arg6: memref<256x128xbf16, #tpu.memory_space<vmem>>) attributes {dimension_semantics = [#tpu.dimension_semantics<parallel>], iteration_bounds = array<i64: 2>, scalar_prefetch = 0 : i64, scratch_operands = 0 : i64, tpu.core_type = #tpu.core_type<tc>, window_params = [{transform_indices = @transform_0, window_bounds = array<i64: 256, 128>}, {pipeline_mode = #tpu.pipeline_mode<synchronous>, transform_indices = @transform_1, window_bounds = array<i64: 128, 256>}, {pipeline_mode = #tpu.pipeline_mode<synchronous>, transform_indices = @transform_2, window_bounds = array<i64: 1, 128>}, {pipeline_mode = #tpu.pipeline_mode<synchronous>, transform_indices = @transform_3, window_bounds = array<i64: 128, 128>}, {pipeline_mode = #tpu.pipeline_mode<synchronous>, transform_indices = @transform_4, window_bounds = array<i64: 1, 128>}, {transform_indices = @transform_5, window_bounds = array<i64: 256, 128>}]} {
    %c0 = arith.constant 0 : index
    %c0_0 = arith.constant 0 : index
    %0 = vector.load %arg1[%c0, %c0_0] : memref<256x128xbf16, #tpu.memory_space<vmem>>, vector<256x128xbf16>
    %c0_1 = arith.constant 0 : index
    %c0_2 = arith.constant 0 : index
    %1 = vector.load %arg2[%c0_1, %c0_2] : memref<128x256xbf16, #tpu.memory_space<vmem>>, vector<128x256xbf16>
    %cst = arith.constant dense<0.000000e+00> : vector<256x256xf32>
    %2 = tpu.matmul %0, %1, %cst {dimension_numbers = #tpu.dot_dimension_numbers<[1], [0], [0], [1], [0, 0, 1, 1], [], []>} : vector<256x128xbf16>, vector<128x256xbf16>, vector<256x256xf32> -> vector<256x256xf32>
    %3 = vector.extract_strided_slice %2 {offsets = [0, 0], sizes = [256, 128], strides = [1, 1]} : vector<256x256xf32> to vector<256x128xf32>
    %c0_3 = arith.constant 0 : index
    %c0_4 = arith.constant 0 : index
    %4 = vector.load %arg3[%c0_3, %c0_4] : memref<1x128xf32, #tpu.memory_space<vmem>>, vector<1x128xf32>
    %5 = vector.broadcast %4 : vector<1x128xf32> to vector<256x128xf32>
    %6 = arith.addf %3, %5 : vector<256x128xf32>
    %7 = vector.extract_strided_slice %2 {offsets = [0, 128], sizes = [256, 128], strides = [1, 1]} : vector<256x256xf32> to vector<256x128xf32>
    %cst_5 = arith.constant 0.000000e+00 : f32
    %8 = vector.broadcast %cst_5 : f32 to vector<256x128xf32>
    %9 = arith.cmpf ogt, %6, %8 : vector<256x128xf32>
    %cst_6 = arith.constant 0.00999999977 : f32
    %10 = vector.broadcast %cst_6 : f32 to vector<256x128xf32>
    %11 = arith.mulf %10, %6 : vector<256x128xf32>
    %12 = arith.select %9, %6, %11 : vector<256x128xi1>, vector<256x128xf32>
    %13 = arith.addf %12, %7 : vector<256x128xf32>
    %14 = arith.truncf %13 : vector<256x128xf32> to vector<256x128xbf16>
    %c0_7 = arith.constant 0 : index
    %c0_8 = arith.constant 0 : index
    %15 = vector.load %arg4[%c0_7, %c0_8] : memref<128x128xbf16, #tpu.memory_space<vmem>>, vector<128x128xbf16>
    %cst_9 = arith.constant dense<0.000000e+00> : vector<256x128xf32>
    %16 = tpu.matmul %14, %15, %cst_9 {dimension_numbers = #tpu.dot_dimension_numbers<[1], [0], [0], [1], [0, 0, 1, 1], [], []>} : vector<256x128xbf16>, vector<128x128xbf16>, vector<256x128xf32> -> vector<256x128xf32>
    %c0_10 = arith.constant 0 : index
    %c0_11 = arith.constant 0 : index
    %17 = vector.load %arg5[%c0_10, %c0_11] : memref<1x128xf32, #tpu.memory_space<vmem>>, vector<1x128xf32>
    %18 = vector.broadcast %17 : vector<1x128xf32> to vector<256x128xf32>
    %19 = arith.addf %16, %18 : vector<256x128xf32>
    %20 = arith.truncf %19 : vector<256x128xf32> to vector<256x128xbf16>
    %c0_12 = arith.constant 0 : index
    %c0_13 = arith.constant 0 : index
    %21 = vector.load %arg6[%c0_12, %c0_13] : memref<256x128xbf16, #tpu.memory_space<vmem>>, vector<256x128xbf16>
    tpu.vector_store %arg6[%c0_12, %c0_13], %20 {strides = array<i32>} : memref<256x128xbf16, #tpu.memory_space<vmem>>, vector<256x128xbf16>,
    return
  }
  func.func @transform_0(%arg0: i32) -> (i32, i32) {
    %c0_i32 = arith.constant 0 : i32
    %c0_i32_0 = arith.constant 0 : i32
    return %arg0, %c0_i32 : i32, i32
  }
  func.func @transform_1(%arg0: i32) -> (i32, i32) {
    %c0_i32 = arith.constant 0 : i32
    %c0_i32_0 = arith.constant 0 : i32
    %c0_i32_1 = arith.constant 0 : i32
    return %c0_i32, %c0_i32_0 : i32, i32
  }
  func.func @transform_2(%arg0: i32) -> (i32, i32) {
    %c0_i32 = arith.constant 0 : i32
    %c0_i32_0 = arith.constant 0 : i32
    %c0_i32_1 = arith.constant 0 : i32
    return %c0_i32, %c0_i32_0 : i32, i32
  }
  func.func @transform_3(%arg0: i32) -> (i32, i32) {
    %c0_i32 = arith.constant 0 : i32
    %c0_i32_0 = arith.constant 0 : i32
    %c0_i32_1 = arith.constant 0 : i32
    return %c0_i32, %c0_i32_0 : i32, i32
  }
  func.func @transform_4(%arg0: i32) -> (i32, i32) {
    %c0_i32 = arith.constant 0 : i32
    %c0_i32_0 = arith.constant 0 : i32
    %c0_i32_1 = arith.constant 0 : i32
    return %c0_i32, %c0_i32_0 : i32, i32
  }
  func.func @transform_5(%arg0: i32) -> (i32, i32) {
    %c0_i32 = arith.constant 0 : i32
    %c0_i32_0 = arith.constant 0 : i32
    return %arg0, %c0_i32 : i32, i32
  }
}

</mosaic_0001>

<bundles_post_ra>
// kernel: actor_forward.1
= control target key start
LH: loop header
LB: loop body
LE: loop exit
PB: predicated region body
PF: predicated region fallthrough
CT: control target
= control target key end

     0   :  { %10 = vsyncpa [#allocation3], 0  ;;  %s1997_s0 = inlined_call_operand.hbm [shape: bf16[512,128], index: 0, kind: input, shape index: {}]   ;;  %s1998_s1 = inlined_call_operand.hbm [shape: bf16[128,256], index: 1, kind: input, shape index: {}]   ;;  %s1999_s2 = inlined_call_operand.vmem [shape: f32[1,128], index: 2, kind: input, shape index: {}]   ;;  %s2000_s3 = inlined_call_operand.hbm [shape: bf16[128,128], index: 3, kind: input, shape index: {}]   ;;  %s2001_s4 = inlined_call_operand.vmem [shape: f32[1,128], index: 4, kind: input, shape index: {}]   ;;  %s2002_s5 = inlined_call_operand.vmem [shape: bf16[512,128], index: 5, kind: output, shape index: {}]  }
   0x1   :  { %12 = vsyncpa [#allocation3 + $0x1], 0 }
   0x2   :  { %13 = vsyncpa [#allocation5], 0  ;;  %s1740_s18 = smov 0   ;;  %s1742_s19 = smov 0  }
   0x3   :  { %s1744_s20 = smov 0   ;;  %s1746_s21 = smov 0  }
   0x4 LB: > { %s1171_s22 = sadd.s32 4294967295, %s1702_s21   ;;  %p39_p0 = scmp.ne.s32.totalorder %s1694_s19, %s1690_s18  ;;  %s1702_s21 = sphi %s1746_s21, %s2011_s21   ;;  %s1698_s20 = sphi %s1744_s20, %s2010_s20   ;;  %s1694_s19 = sphi %s1742_s19, %s2009_s19   ;;  %s1690_s18 = sphi %s1740_s18, %s2008_s18  }
   0x5   : > { %p1762_p1 = scmp.eq.s32.totalorder %s1171_s22, 0  ;;  %p1173_p2 = scmp.ge.s32.totalorder %s1702_s21, 1 }
   0x6   : > { %p160_p3 = scmp.lt.s32.totalorder %s1702_s21, 3  ;;  %s171_s27 = sshll.u32 %s1998_s1, 4  ;;  %s172_s27 = int_to_ptr.hbm [resolvable:$true] %s171_s27 }
   0x7   : > { %p1770_p4 = por %p1762_p1, %p39_p0  ;;  %s1704_s29 = smov [#allocation4]  }
   0x8   : > { %p1777_p5 = pnand %p1173_p2, %p160_p3  ;;  %s173_s30 = sshll.u32 %s1704_s29, 4  ;;  %s174_s30 = int_to_ptr.vmem [resolvable:$true] %s173_s30 }
   0x9   : > { %s188_s8 = sshll.u32 %s2000_s3, 4  ;;  %s1705_s9 = smov 128   ;;  %s189_s8 = int_to_ptr.hbm [resolvable:$true] %s188_s8 }
   0xa   : > { %p1518_p6 = pneg %p1777_p5  ;;  %s1706_s10 = smov 8  }
   0xb   : > { %s1707_s11 = smov [#allocation6]   ;;  %s1708_s13 = smov 64  }
   0xc   : > { %p1519_p7 = pnand %p1518_p6, %p1762_p1  ;;  %s190_s12 = sshll.u32 %s1707_s11, 4  ;;  %s191_s12 = int_to_ptr.vmem [resolvable:$true] %s190_s12 }
   0xd   : > { %s1709_s14 = smov 4   ;;  %s1792_s15 = sadd.s32 1, %s1702_s21  }
   0xe   : > { %1521 = dma.hbm_to_vmem [thread:$0]  (!%p1519_p7), %s172_s27, 2048, %s174_s30, [#allocation5], %s1705_s9, %s1705_s9, %s1706_s10  }
   0xf   : > { %1524 = dma.hbm_to_vmem [thread:$0]  (!%p1519_p7), %s189_s8, 1024, %s191_s12, [#allocation5], %s1708_s13, %s1708_s13, %s1709_s14  }
  0x10   : > { %s23_s16 = ssub.s32 %s1702_s21, %s1792_s15  ;;  %s26_s17 = sadd.s32 1, %s1698_s20 }
  0x11   : > { %p24_p8 = scmp.eq.s32.totalorder %s23_s16, 0  ;;  %p33_p9 = scmp.ne.s32.totalorder %s1698_s20, %s1694_s19 }
  0x12   : > { %p34_p10 = scmp.eq.s32.totalorder %s1702_s21, 0  ;;  %s207_s25 = sand.u32 1, %s1698_s20  }
  0x13   : > { %s1801_s18 = scalar_select %p24_p8, %s1698_s20, %s26_s17  }
  0x14   : > { %p35_p11 = por %p34_p10, %p33_p9  ;;  %s1348_s26 = sshll.u32 %s1702_s21, 7 }
  0x15   : > { %p1531_p12 = scmp.lt.s32.totalorder %s1702_s21, 2  ;;  %s1177_s27 = sshll.u32 %s207_s25, 7 }
  0x16   : > { %s216_s6 = scalar_lea.hbm %s1997_s0, %s1348_s26  ;;  %s211_s8 = scalar_lea.vmem [#allocation2], %s1177_s27 }
  0x17   : > { %s217_s7 = sshll.u32 %s216_s6, 4  ;;  %s219_s9 = sshll.u32 %s211_s8, 4  ;;  %s218_s7 = int_to_ptr.hbm [resolvable:$true] %s217_s7  ;;  %s220_s9 = int_to_ptr.vmem [resolvable:$true] %s219_s9 }
  0x18   : > { %p1809_p13 = pnand %p1531_p12, %p35_p11  ;;  %s208_s11 = scalar_lea.sflag [#allocation3], %s207_s25 }
  0x19   : > { %s1634_s12 = sshra.s32 %s218_s7, 4  ;;  %s1641_s27 = scalar_lea.hbm %s1997_s0, 256  ;;  %s1635_s12 = int_to_ptr.hbm [resolvable:$true] %s1634_s12 }
  0x1a   : > { %s1636_s16 = scalar_lea.hbm %s1635_s12, 128  ;;  %p1638_p2 = pneg %p1809_p13 }
  0x1b   : > { %p1637_p0 = scmp.ne.s32.totalorder %s1635_s12, %s1636_s16  ;;  %p1642_p7 = scmp.lt.s32.totalorder %s1635_s12, %s1997_s0 }
  0x1c   : > { %p1643_p8 = scmp.lt.s32.totalorder %s1641_s27, %s1636_s16 }
  0x1d   : > { %p1639_p3 = pnand %p1638_p2, %p1637_p0 }
  0x1e   : > { %p1644_p9 = por %p1643_p8, %p1642_p7 }
  0x1f   : > { %p1640_p6 = pneg %p1639_p3 }
  0x21   : > { %p1645_p10 = pnand %p1644_p9, %p1640_p6 }
  0x23   : > { %1648 = shalt.err (!%p1645_p10)
}
  0x24   : > { %1528 = dma.hbm_to_vmem [thread:$0]  (!%p1809_p13), %s218_s7, 2048, %s220_s9, %s208_s11, %s1708_s13, %s1708_s13, %s1709_s14  }
  0x25   : > { %231 = sbr.rel (%p1777_p5) target bundleno = 543 (0x21f), region = 40  ;;  %s233_s25 = sand.u32 (!%p1777_p5), 1, %s1694_s19  }
  0x26   : > { %s1181_s6 = sshll.u32 (!%p1777_p5), %s233_s25, 7  ;;  %s234_s8 = scalar_lea.sflag (!%p1777_p5), [#allocation3], %s233_s25 }
  0x27   : > { %s1829_s17 = scalar_lea.vmem (!%p1777_p5), [#allocation2], %s1181_s6 }
  0x2a   : > { %1681 = dma.done.wait (%p1770_p4), %s234_s8, 2048  }
  0x2b   : > { %1683 = vsyncadd (%p1770_p4), %s234_s8, 4294965248 }
  0x2c   : > { %1685 = dma.done.wait (%p1762_p1), [#allocation5], 3072  }
  0x2d   : > { %1687 = vsyncadd (%p1762_p1), [#allocation5], 4294964224  ;;  %v1308_v0 = vld [vmem:[#allocation4 + $0x70] sm:$0xf]  ;;  %v1380_v1 = vld [vmem:[#allocation4 + $0x74] sm:$0xf0] }
  0x2e   : > { %v1379_v2 = vld [vmem:[#allocation4 + $0x74] sm:$0xf]  ;;  %v1309_v3 = vor.u32 %v1380_v1, %v1308_v0  ;;  %v1310_v4 = vld [vmem:[#allocation4 + $0x78] sm:$0xf0]  ;;  %v1300_v5 = vld [vmem:[#allocation4 + $0x60] sm:$0xf] }
  0x2f   : > { %v1378_v6 = vld [vmem:[#allocation4 + $0x64] sm:$0xf0]  ;;  %v1839_v7 = vor.u32 %v1379_v2, %v1310_v4  ;;  %v1377_v8 = vld [vmem:[#allocation4 + $0x64] sm:$0xf]  ;;  %v1302_v9 = vld [vmem:[#allocation4 + $0x68] sm:$0xf0] }
  0x30   : > { %506 = vmatpush.bf16.msra.mxu0 %v1309_v3  ;;  %1484 = vmatpush.bf16.msra.mxu3 %v1309_v3  ;;  %v1301_v10 = vor.u32 %v1378_v6, %v1300_v5  ;;  %v1842_v11 = vor.u32 %v1377_v8, %v1302_v9  ;;  %v1292_v12 = vld [vmem:[#allocation4 + $0x50] sm:$0xf]  ;;  %v1376_v13 = vld [vmem:[#allocation4 + $0x54] sm:$0xf0]  ;;  %v1375_v14 = vld [vmem:[#allocation4 + $0x54] sm:$0xf] }
  0x31   : > { %595 = vmatpush.bf16.msra.mxu1 %v1839_v7  ;;  %v1294_v15 = vld [vmem:[#allocation4 + $0x58] sm:$0xf0]  ;;  %v1293_v16 = vor.u32 %v1376_v13, %v1292_v12  ;;  %v1284_v18 = vld [vmem:[#allocation4 + $0x40] sm:$0xf]  ;;  %v1374_v19 = vld [vmem:[#allocation4 + $0x44] sm:$0xf0] }
  0x32   : > { %v1297_v17 = vor.u32 %v1375_v14, %v1294_v15  ;;  %v1373_v20 = vld [vmem:[#allocation4 + $0x44] sm:$0xf]  ;;  %v1286_v21 = vld [vmem:[#allocation4 + $0x48] sm:$0xf0]  ;;  %v1285_v22 = vor.u32 %v1374_v19, %v1284_v18  ;;  %v1276_v24 = vld [vmem:[#allocation4 + $0x30] sm:$0xf] }
  0x33   : > { %v1289_v23 = vor.u32 %v1373_v20, %v1286_v21  ;;  %v1372_v25 = vld [vmem:[#allocation4 + $0x34] sm:$0xf0]  ;;  %v1371_v26 = vld [vmem:[#allocation4 + $0x34] sm:$0xf]  ;;  %v1278_v27 = vld [vmem:[#allocation4 + $0x38] sm:$0xf0] }
  0x34   : > { %507 = vmatpush.bf16.msra.mxu0 %v1301_v10  ;;  %1485 = vmatpush.bf16.msra.mxu3 %v1301_v10  ;;  %v1277_v28 = vor.u32 %v1372_v25, %v1276_v24  ;;  %v1281_v29 = vor.u32 %v1371_v26, %v1278_v27  ;;  %v1268_v30 = vld [vmem:[#allocation4 + $0x20] sm:$0xf]  ;;  %v1370_v31 = vld [vmem:[#allocation4 + $0x24] sm:$0xf0]  ;;  %v1369_v32 = vld [vmem:[#allocation4 + $0x24] sm:$0xf] }
  0x35   : > { %596 = vmatpush.bf16.msra.mxu1 %v1842_v11  ;;  %v1270_v33 = vld [vmem:[#allocation4 + $0x28] sm:$0xf0]  ;;  %v1269_v34 = vor.u32 %v1370_v31, %v1268_v30  ;;  %v1260_v36 = vld [vmem:[#allocation4 + $0x10] sm:$0xf]  ;;  %v1368_v37 = vld [vmem:[#allocation4 + $0x14] sm:$0xf0] }
  0x36   : > { %v1273_v35 = vor.u32 %v1369_v32, %v1270_v33  ;;  %v1367_v38 = vld [vmem:[#allocation4 + $0x14] sm:$0xf]  ;;  %v1262_v39 = vld [vmem:[#allocation4 + $0x18] sm:$0xf0]  ;;  %v1261_v40 = vor.u32 %v1368_v37, %v1260_v36  ;;  %v1252_v42 = vld [vmem:[#allocation4] sm:$0xf] }
  0x37   : > { %v1265_v41 = vor.u32 %v1367_v38, %v1262_v39  ;;  %v1366_v43 = vld [vmem:[#allocation4 + $0x4] sm:$0xf0]  ;;  %v1365_v44 = vld [vmem:[#allocation4 + $0x4] sm:$0xf]  ;;  %v1254_v45 = vld [vmem:[#allocation4 + $0x8] sm:$0xf0] }
  0x38   : > { %508 = vmatpush.bf16.msra.mxu0 %v1293_v16  ;;  %1486 = vmatpush.bf16.msra.mxu3 %v1293_v16  ;;  %v1253_v46 = vor.u32 %v1366_v43, %v1252_v42  ;;  %v1257_v47 = vor.u32 %v1365_v44, %v1254_v45  ;;  %v1349_v48 = vld [vmem:[%s1829_s17] sm:$0xff]  ;;  %v1350_v50 = vld [vmem:[%s1829_s17 + $0x8] sm:$0xff]  ;;  %v1351_v52 = vld [vmem:[%s1829_s17 + $0x10] sm:$0xff]  ;;  %s1184_s28 = sshll.u32 %s1171_s22, 5 }
  0x39   : > { %597 = vmatpush.bf16.msra.mxu1 %v1297_v17  ;;  %v1361_v49 = vld [vmem:[%s1829_s17 + $0x60] sm:$0xff]  ;;  %v1362_v51 = vld [vmem:[%s1829_s17 + $0x68] sm:$0xff]  ;;  %v1363_v53 = vld [vmem:[%s1829_s17 + $0x70] sm:$0xff]  ;;  %p277_p1 = scmp.lt.s32.totalorder %s1184_s28, 63 }
  0x3a   : > { %v1352_v54 = vld [vmem:[%s1829_s17 + $0x18] sm:$0xff]  ;;  %v1353_v56 = vld [vmem:[%s1829_s17 + $0x20] sm:$0xff]  ;;  %v1354_v57 = vld [vmem:[%s1829_s17 + $0x28] sm:$0xff] }
  0x3b   : > { %v1364_v55 = vld [vmem:[%s1829_s17 + $0x78] sm:$0xff]  ;;  %v1387_v59 = vld [vmem:[#allocation6 + $0x30] sm:$0xff]  ;;  %v1386_v60 = vld [vmem:[#allocation6 + $0x28] sm:$0xff]  ;;  %s2013_s28 = smov (!%p277_p1, %s1184_s28), 63 }
  0x3c   : > { %509 = vmatpush.bf16.msra.mxu0 %v1285_v22  ;;  %1487 = vmatpush.bf16.msra.mxu3 %v1285_v22  ;;  %v1388_v58 = vld [vmem:[#allocation6 + $0x38] sm:$0xff]  ;;  %v1385_v61 = vld [vmem:[#allocation6 + $0x20] sm:$0xff]  ;;  %v1355_v62 = vld [vmem:[%s1829_s17 + $0x30] sm:$0xff]  ;;  %s1185_s21 = sshll.u32 %s2013_s28, 2 }
  0x3d   : > { %598 = vmatpush.bf16.msra.mxu1 %v1289_v23  ;;  %932 = vmatpush.bf16.msra.mxu2 %v1388_v58  ;;  %v1384_v63 = vld [vmem:[#allocation6 + $0x18] sm:$0xff]  ;;  %v1383_v0 = vld [vmem:[#allocation6 + $0x10] sm:$0xff]  ;;  %v1382_v1 = vld [vmem:[#allocation6 + $0x8] sm:$0xff]  ;;  %s1932_s9 = scalar_lea.vmem %s2002_s5, %s1185_s21 }
  0x3e   : > { %v1381_v2 = vld [vmem:[#allocation6] sm:$0xff]  ;;  %v1356_v3 = vld [vmem:[%s1829_s17 + $0x38] sm:$0xff]  ;;  %v1358_v20 = vld [vmem:[%s1829_s17 + $0x48] sm:$0xff] }
  0x3f   : > { %v1862_v4 = vld [vmem:[%s1999_s2] ss:$0 sm:$0xff]  ;;  %v1359_v36 = vld [vmem:[%s1829_s17 + $0x50] sm:$0xff] }
  0x40   : > { %510 = vmatpush.bf16.msra.mxu0 %v1277_v28  ;;  %1488 = vmatpush.bf16.msra.mxu3 %v1277_v28  ;;  %v1357_v5 = vld [vmem:[%s1829_s17 + $0x40] sm:$0xff] }
  0x41   : > { %599 = vmatpush.bf16.msra.mxu1 %v1281_v29  ;;  %933 = vmatpush.bf16.msra.mxu2 %v1387_v59 }
  0x44   : > { %511 = vmatpush.bf16.msra.mxu0 %v1269_v34  ;;  %1489 = vmatpush.bf16.msra.mxu3 %v1269_v34 }
  0x45   : > { %600 = vmatpush.bf16.msra.mxu1 %v1273_v35  ;;  %934 = vmatpush.bf16.msra.mxu2 %v1386_v60 }
  0x48   : > { %512 = vmatpush.bf16.msra.mxu0 %v1261_v40  ;;  %1490 = vmatpush.bf16.msra.mxu3 %v1261_v40 }
  0x49   : > { %601 = vmatpush.bf16.msra.mxu1 %v1265_v41  ;;  %935 = vmatpush.bf16.msra.mxu2 %v1385_v61 }
  0x4c   : > { %513 = vmatpush.bf16.msra.mxu0 %v1253_v46  ;;  %1491 = vmatpush.bf16.msra.mxu3 %v1253_v46 }
  0x4d   : > { %602 = vmatpush.bf16.msra.mxu1 %v1257_v47  ;;  %936 = vmatpush.bf16.msra.mxu2 %v1384_v63 }
  0x4f   : > { %514 = vmatmul.bf16.vlgmr.msra.gmra.mxu0 %v1349_v48  ;;  %574 = vmatmul.bf16.vlgmr.msra.gmra.mxu3 %v1361_v49 }
  0x50   : > { %1492 = vmatpush.bf16.msrb.mxu3 %v1839_v7  ;;  %603 = vmatmul.bf16.vlgmr.msra.gmra.mxu1 %v1349_v48 }
  0x51   : > { %937 = vmatpush.bf16.msra.mxu2 %v1383_v0 }
  0x54   : > { %1493 = vmatpush.bf16.msrb.mxu3 %v1842_v11 }
  0x55   : > { %938 = vmatpush.bf16.msra.mxu2 %v1382_v1 }
  0x58   : > { %1494 = vmatpush.bf16.msrb.mxu3 %v1297_v17 }
  0x59   : > { %939 = vmatpush.bf16.msra.mxu2 %v1381_v2 }
  0x5c   : > { %1495 = vmatpush.bf16.msrb.mxu3 %v1289_v23 }
  0x5f   : > { %519 = vmatmul.bf16.gmra.mxu0 %v1350_v50  ;;  %579 = vmatmul.bf16.gmra.mxu3 %v1362_v51 }
  0x60   : > { %1496 = vmatpush.bf16.msrb.mxu3 %v1281_v29  ;;  %608 = vmatmul.bf16.gmra.mxu1 %v1350_v50 }
  0x64   : > { %1497 = vmatpush.bf16.msrb.mxu3 %v1273_v35 }
  0x68   : > { %1498 = vmatpush.bf16.msrb.mxu3 %v1265_v41 }
  0x6c   : > { %1499 = vmatpush.bf16.msrb.mxu3 %v1257_v47 }
  0x6f   : > { %524 = vmatmul.bf16.gmra.mxu0 %v1351_v52  ;;  %584 = vmatmul.bf16.gmra.mxu3 %v1363_v53 }
  0x70   : > { %613 = vmatmul.bf16.gmra.mxu1 %v1351_v52  ;;  %1500 = vmatpush.bf16.msra.mxu3 %v1388_v58  ;;  %v1360_v52 = vld [vmem:[%s1829_s17 + $0x58] sm:$0xff] }
  0x74   : > { %1501 = vmatpush.bf16.msra.mxu3 %v1387_v59 }
  0x78   : > { %1502 = vmatpush.bf16.msra.mxu3 %v1386_v60 }
  0x7c   : > { %1503 = vmatpush.bf16.msra.mxu3 %v1385_v61 }
  0x7f   : > { %529 = vmatmul.bf16.gmra.mxu0 %v1352_v54  ;;  %589 = vmatmul.bf16.gmra.mxu3 %v1364_v55 }
  0x80   : > { %618 = vmatmul.bf16.gmra.mxu1 %v1352_v54  ;;  %1504 = vmatpush.bf16.msra.mxu3 %v1384_v63 }
  0x84   : > { %1505 = vmatpush.bf16.msra.mxu3 %v1383_v0 }
  0x88   : > { %1506 = vmatpush.bf16.msra.mxu3 %v1382_v1 }
  0x8c   : > { %1507 = vmatpush.bf16.msra.mxu3 %v1381_v2 }
  0x8f   : > { %534 = vmatmul.bf16.gmra.mxu0 %v1353_v56  ;;  %663 = vmatmul.bf16.vlgmr.msrb.gmra.mxu3 %v1361_v49 }
  0x90   : > { %623 = vmatmul.bf16.gmra.mxu1 %v1353_v56 }
  0x9f   : > { %539 = vmatmul.bf16.gmra.mxu0 %v1354_v57  ;;  %668 = vmatmul.bf16.gmra.mxu3 %v1362_v51 }
  0xa0   : > { %628 = vmatmul.bf16.gmra.mxu1 %v1354_v57 }
  0xaf   : > { %544 = vmatmul.bf16.gmra.mxu0 %v1355_v62  ;;  %673 = vmatmul.bf16.gmra.mxu3 %v1363_v53 }
  0xb0   : > { %633 = vmatmul.bf16.gmra.mxu1 %v1355_v62 }
  0xbf   : > { %549 = vmatmul.bf16.gmra.mxu0 %v1356_v3  ;;  %678 = vmatmul.bf16.gmra.mxu3 %v1364_v55 }
  0xc0   : > { %638 = vmatmul.bf16.gmra.mxu1 %v1356_v3 }
  0xcc   : > { %v515_v6 = vpop.f32.mrf.mxu0 }
  0xcd   : > { %v604_v7 = vpop.f32.mrf.mxu1  ;;  %v688_v8 = vadd.f32 %v1862_v4, %v515_v6 }
  0xcf   : > { %554 = vmatmul.bf16.gmra.mxu0 %v1357_v5  ;;  %v752_v10 = vmul.f32 0.01, %v688_v8  ;;  %vm720_vm0 = vcmp.gt.f32.partialorder %v688_v8, 0.0 }
  0xd0   : > { %643 = vmatmul.bf16.gmra.mxu1 %v1357_v5 }
  0xd1   : > { %v784_v14 = vsel %vm720_vm0, %v688_v8, %v752_v10 }
  0xd2   : > { %v1866_v9 = vpop.f32.mrf.mxu3  ;;  %v816_v17 = vadd.f32 %v784_v14, %v604_v7 }
  0xd3   : > { %v712_v10 = vadd.f32 %v1862_v4, %v1866_v9 }
  0xd4   : > { %v517_v11 = vpop.f32.mrf.mxu0 }
  0xd5   : > { %v689_v12 = vadd.f32 %v1862_v4, %v517_v11  ;;  %v606_v13 = vpop.f32.mrf.mxu1  ;;  %v776_v14 = vmul.f32 0.01, %v712_v10  ;;  %vm744_vm9 = vcmp.gt.f32.partialorder %v712_v10, 0.0 }
  0xd7   : > { %v753_v15 = vmul.f32 0.01, %v689_v12  ;;  %vm721_vm1 = vcmp.gt.f32.partialorder %v689_v12, 0.0 }
  0xd9   : > { %v785_v16 = vsel %vm721_vm1, %v689_v12, %v753_v15 }
  0xda   : > { %v817_v18 = vadd.f32 %v785_v16, %v606_v13  ;;  %v1869_v19 = vpop.f32.mrf.mxu3 }
  0xdb   : > { %v713_v11 = vadd.f32 %v1862_v4, %v1869_v19 }
  0xdc   : > { %v520_v21 = vpop.f32.mrf.mxu0  ;;  %v848_v22 = vpack.c.bf16 %v817_v18, %v816_v17 }
  0xdd   : > { %v609_v23 = vpop.f32.mrf.mxu1  ;;  %v690_v24 = vadd.f32 %v1862_v4, %v520_v21  ;;  %v777_v18 = vmul.f32 0.01, %v713_v11  ;;  %vm745_vm11 = vcmp.gt.f32.partialorder %v713_v11, 0.0 }
  0xde   : > { %940 = vmatmul.bf16.vlgmr.msra.gmra.mxu2 %v848_v22  ;;  %v808_v22 = vsel %vm744_vm9, %v712_v10, %v776_v14 }
  0xdf   : > { %559 = vmatmul.bf16.gmra.mxu0 %v1358_v20  ;;  %v754_v26 = vmul.f32 0.01, %v690_v24  ;;  %vm722_vm2 = vcmp.gt.f32.partialorder %v690_v24, 0.0  ;;  %v809_v19 = vsel %vm745_vm11, %v713_v11, %v777_v18 }
  0xe0   : > { %648 = vmatmul.bf16.gmra.mxu1 %v1358_v20 }
  0xe1   : > { %v786_v30 = vsel %vm722_vm2, %v690_v24, %v754_v26 }
  0xe2   : > { %v1873_v25 = vpop.f32.mrf.mxu3  ;;  %v818_v33 = vadd.f32 %v786_v30, %v609_v23 }
  0xe4   : > { %v522_v27 = vpop.f32.mrf.mxu0 }
  0xe5   : > { %v691_v28 = vadd.f32 %v1862_v4, %v522_v27  ;;  %v611_v29 = vpop.f32.mrf.mxu1 }
  0xe7   : > { %v755_v31 = vmul.f32 0.01, %v691_v28  ;;  %vm723_vm3 = vcmp.gt.f32.partialorder %v691_v28, 0.0 }
  0xe9   : > { %v787_v32 = vsel %vm723_vm3, %v691_v28, %v755_v31 }
  0xea   : > { %v819_v34 = vadd.f32 %v787_v32, %v611_v29  ;;  %v1876_v35 = vpop.f32.mrf.mxu3 }
  0xec   : > { %v525_v37 = vpop.f32.mrf.mxu0  ;;  %v849_v38 = vpack.c.bf16 %v819_v34, %v818_v33  ;;  %v714_v34 = vadd.f32 %v1862_v4, %v1873_v25 }
  0xed   : > { %v614_v39 = vpop.f32.mrf.mxu1  ;;  %v692_v40 = vadd.f32 %v1862_v4, %v525_v37 }
  0xee   : > { %945 = vmatmul.bf16.gmra.mxu2 %v849_v38  ;;  %vm746_vm13 = vcmp.gt.f32.partialorder %v714_v34, 0.0 }
  0xef   : > { %564 = vmatmul.bf16.gmra.mxu0 %v1359_v36  ;;  %v756_v42 = vmul.f32 0.01, %v692_v40  ;;  %vm724_vm4 = vcmp.gt.f32.partialorder %v692_v40, 0.0 }
  0xf0   : > { %653 = vmatmul.bf16.gmra.mxu1 %v1359_v36  ;;  %v715_v36 = vadd.f32 %v1862_v4, %v1876_v35 }
  0xf1   : > { %v788_v46 = vsel %vm724_vm4, %v692_v40, %v756_v42 }
  0xf2   : > { %v1880_v41 = vpop.f32.mrf.mxu3  ;;  %v820_v49 = vadd.f32 %v788_v46, %v614_v39  ;;  %v778_v39 = vmul.f32 0.01, %v714_v34  ;;  %vm747_vm15 = vcmp.gt.f32.partialorder %v715_v36, 0.0 }
  0xf4   : > { %v527_v43 = vpop.f32.mrf.mxu0 }
  0xf5   : > { %v693_v44 = vadd.f32 %v1862_v4, %v527_v43  ;;  %v616_v45 = vpop.f32.mrf.mxu1 }
  0xf7   : > { %v757_v47 = vmul.f32 0.01, %v693_v44  ;;  %vm725_vm5 = vcmp.gt.f32.partialorder %v693_v44, 0.0 }
  0xf9   : > { %v789_v48 = vsel %vm725_vm5, %v693_v44, %v757_v47  ;;  %v779_v44 = vmul.f32 0.01, %v715_v36  ;;  %v810_v47 = vsel %vm746_vm13, %v714_v34, %v778_v39 }
  0xfa   : > { %v821_v50 = vadd.f32 %v789_v48, %v616_v45  ;;  %v1883_v51 = vpop.f32.mrf.mxu3 }
  0xfb   : > { %v811_v35 = vsel %vm747_vm15, %v715_v36, %v779_v44 }
  0xfc   : > { %v530_v53 = vpop.f32.mrf.mxu0  ;;  %v850_v54 = vpack.c.bf16 %v821_v50, %v820_v49 }
  0xfd   : > { %v619_v55 = vpop.f32.mrf.mxu1  ;;  %v694_v56 = vadd.f32 %v1862_v4, %v530_v53 }
  0xfe   : > { %950 = vmatmul.bf16.gmra.mxu2 %v850_v54 }
  0xff   : > { %569 = vmatmul.bf16.gmra.mxu0 %v1360_v52  ;;  %v758_v58 = vmul.f32 0.01, %v694_v56  ;;  %vm726_vm6 = vcmp.gt.f32.partialorder %v694_v56, 0.0 }
 0x100   : > { %658 = vmatmul.bf16.gmra.mxu1 %v1360_v52 }
 0x101   : > { %v790_v62 = vsel %vm726_vm6, %v694_v56, %v758_v58 }
 0x102   : > { %v1887_v57 = vpop.f32.mrf.mxu3  ;;  %v822_v1 = vadd.f32 %v790_v62, %v619_v55 }
 0x104   : > { %v532_v59 = vpop.f32.mrf.mxu0 }
 0x105   : > { %v695_v60 = vadd.f32 %v1862_v4, %v532_v59  ;;  %v621_v61 = vpop.f32.mrf.mxu1 }
 0x107   : > { %v759_v63 = vmul.f32 0.01, %v695_v60  ;;  %vm727_vm7 = vcmp.gt.f32.partialorder %v695_v60, 0.0 }
 0x109   : > { %v791_v0 = vsel %vm727_vm7, %v695_v60, %v759_v63  ;;  %v716_v60 = vadd.f32 %v1862_v4, %v1880_v41 }
 0x10a   : > { %v823_v2 = vadd.f32 %v791_v0, %v621_v61  ;;  %v1890_v3 = vpop.f32.mrf.mxu3  ;;  %v717_v61 = vadd.f32 %v1862_v4, %v1883_v51 }
 0x10b   : > { %v780_v0 = vmul.f32 0.01, %v716_v60  ;;  %vm748_vm1 = vcmp.gt.f32.partialorder %v716_v60, 0.0 }
 0x10c   : > { %v535_v5 = vpop.f32.mrf.mxu0  ;;  %v851_v6 = vpack.c.bf16 %v823_v2, %v822_v1  ;;  %vm749_vm3 = vcmp.gt.f32.partialorder %v717_v61, 0.0 }
 0x10d   : > { %v624_v7 = vpop.f32.mrf.mxu1  ;;  %v696_v8 = vadd.f32 %v1862_v4, %v535_v5  ;;  %v812_v10 = vsel %vm748_vm1, %v716_v60, %v780_v0 }
 0x10e   : > { %955 = vmatmul.bf16.gmra.mxu2 %v851_v6  ;;  %v781_v6 = vmul.f32 0.01, %v717_v61 }
 0x10f   : > { %v760_v13 = vmul.f32 0.01, %v696_v8  ;;  %vm728_vm8 = vcmp.gt.f32.partialorder %v696_v8, 0.0 }
 0x110   : > { %v813_v51 = vsel %vm749_vm3, %v717_v61, %v781_v6 }
 0x111   : > { %v792_v20 = vsel %vm728_vm8, %v696_v8, %v760_v13 }
 0x112   : > { %v664_v12 = vpop.f32.mrf.mxu3  ;;  %v824_v9 = vadd.f32 %v792_v20, %v624_v7 }
 0x113   : > { %v840_v27 = vadd.f32 %v808_v22, %v664_v12  ;;  %v718_v22 = vadd.f32 %v1862_v4, %v1887_v57 }
 0x114   : > { %v537_v15 = vpop.f32.mrf.mxu0 }
 0x115   : > { %v697_v16 = vadd.f32 %v1862_v4, %v537_v15  ;;  %v626_v17 = vpop.f32.mrf.mxu1  ;;  %vm750_vm5 = vcmp.gt.f32.partialorder %v718_v22, 0.0 }
 0x117   : > { %v761_v21 = vmul.f32 0.01, %v697_v16  ;;  %vm729_vm10 = vcmp.gt.f32.partialorder %v697_v16, 0.0 }
 0x119   : > { %v793_v23 = vsel %vm729_vm10, %v697_v16, %v761_v21 }
 0x11a   : > { %v825_v24 = vadd.f32 %v793_v23, %v626_v17  ;;  %v666_v26 = vpop.f32.mrf.mxu3  ;;  %v719_v23 = vadd.f32 %v1862_v4, %v1890_v3 }
 0x11b   : > { %v841_v28 = vadd.f32 %v809_v19, %v666_v26  ;;  %v782_v26 = vmul.f32 0.01, %v718_v22 }
 0x11c   : > { %v540_v29 = vpop.f32.mrf.mxu0  ;;  %v852_v30 = vpack.c.bf16 %v825_v24, %v824_v9  ;;  %vm751_vm7 = vcmp.gt.f32.partialorder %v719_v23, 0.0 }
 0x11d   : > { %v860_v31 = vpack.c.bf16 %v841_v28, %v840_v27  ;;  %v629_v32 = vpop.f32.mrf.mxu1  ;;  %v698_v33 = vadd.f32 %v1862_v4, %v540_v29  ;;  %v783_v29 = vmul.f32 0.01, %v719_v23 }
 0x11e   : > { %960 = vmatmul.bf16.gmra.mxu2 %v852_v30 }
 0x11f   : > { %1000 = vmatmul.bf16.vlgmr.msra.gmra.mxu3 %v860_v31  ;;  %v762_v38 = vmul.f32 0.01, %v698_v33  ;;  %vm730_vm12 = vcmp.gt.f32.partialorder %v698_v33, 0.0  ;;  %v815_v3 = vsel %vm751_vm7, %v719_v23, %v783_v29 }
 0x121   : > { %v794_v45 = vsel %vm730_vm12, %v698_v33, %v762_v38 }
 0x122   : > { %v669_v37 = vpop.f32.mrf.mxu3  ;;  %v826_v25 = vadd.f32 %v794_v45, %v629_v32  ;;  %v814_v32 = vsel %vm750_vm5, %v718_v22, %v782_v26 }
 0x123   : > { %v842_v52 = vadd.f32 %v810_v47, %v669_v37 }
 0x124   : > { %v542_v40 = vpop.f32.mrf.mxu0 }
 0x125   : > { %v699_v42 = vadd.f32 %v1862_v4, %v542_v40  ;;  %v631_v43 = vpop.f32.mrf.mxu1 }
 0x127   : > { %v763_v46 = vmul.f32 0.01, %v699_v42  ;;  %vm731_vm14 = vcmp.gt.f32.partialorder %v699_v42, 0.0 }
 0x129   : > { %v795_v48 = vsel %vm731_vm14, %v699_v42, %v763_v46 }
 0x12a   : > { %v827_v49 = vadd.f32 %v795_v48, %v631_v43  ;;  %v671_v50 = vpop.f32.mrf.mxu3 }
 0x12b   : > { %v843_v53 = vadd.f32 %v811_v35, %v671_v50 }
 0x12c   : > { %v545_v54 = vpop.f32.mrf.mxu0  ;;  %v853_v55 = vpack.c.bf16 %v827_v49, %v826_v25 }
 0x12d   : > { %v634_v56 = vpop.f32.mrf.mxu1  ;;  %v861_v58 = vpack.c.bf16 %v843_v53, %v842_v52  ;;  %v700_v59 = vadd.f32 %v1862_v4, %v545_v54 }
 0x12e   : > { %965 = vmatmul.bf16.gmra.mxu2 %v853_v55 }
 0x12f   : > { %1005 = vmatmul.bf16.gmra.mxu3 %v861_v58  ;;  %v764_v63 = vmul.f32 0.01, %v700_v59  ;;  %vm732_vm0 = vcmp.gt.f32.partialorder %v700_v59, 0.0 }
 0x131   : > { %v796_v7 = vsel %vm732_vm0, %v700_v59, %v764_v63  ;;  %v1925_v63 = vld [vmem:[%s2001_s4] ss:$0 sm:$0xff] }
 0x132   : > { %v674_v62 = vpop.f32.mrf.mxu3  ;;  %v828_v41 = vadd.f32 %v796_v7, %v634_v56 }
 0x133   : > { %v844_v14 = vadd.f32 %v812_v10, %v674_v62 }
 0x134   : > { %v547_v1 = vpop.f32.mrf.mxu0 }
 0x135   : > { %v701_v2 = vadd.f32 %v1862_v4, %v547_v1  ;;  %v636_v5 = vpop.f32.mrf.mxu1 }
 0x137   : > { %v765_v8 = vmul.f32 0.01, %v701_v2  ;;  %vm733_vm2 = vcmp.gt.f32.partialorder %v701_v2, 0.0 }
 0x139   : > { %v797_v11 = vsel %vm733_vm2, %v701_v2, %v765_v8 }
 0x13a   : > { %v829_v12 = vadd.f32 %v797_v11, %v636_v5  ;;  %v676_v13 = vpop.f32.mrf.mxu3 }
 0x13b   : > { %v845_v15 = vadd.f32 %v813_v51, %v676_v13 }
 0x13c   : > { %v550_v16 = vpop.f32.mrf.mxu0  ;;  %v854_v17 = vpack.c.bf16 %v829_v12, %v828_v41 }
 0x13d   : > { %v639_v18 = vpop.f32.mrf.mxu1  ;;  %v862_v20 = vpack.c.bf16 %v845_v15, %v844_v14  ;;  %v702_v21 = vadd.f32 %v1862_v4, %v550_v16 }
 0x13e   : > { %970 = vmatmul.bf16.gmra.mxu2 %v854_v17 }
 0x13f   : > { %1010 = vmatmul.bf16.gmra.mxu3 %v862_v20  ;;  %v766_v24 = vmul.f32 0.01, %v702_v21  ;;  %vm734_vm4 = vcmp.gt.f32.partialorder %v702_v21, 0.0 }
 0x141   : > { %v798_v30 = vsel %vm734_vm4, %v702_v21, %v766_v24 }
 0x142   : > { %v679_v9 = vpop.f32.mrf.mxu3  ;;  %v830_v57 = vadd.f32 %v798_v30, %v639_v18 }
 0x143   : > { %v846_v37 = vadd.f32 %v814_v32, %v679_v9 }
 0x144   : > { %v552_v19 = vpop.f32.mrf.mxu0 }
 0x145   : > { %v703_v27 = vadd.f32 %v1862_v4, %v552_v19  ;;  %v641_v28 = vpop.f32.mrf.mxu1 }
 0x147   : > { %v767_v31 = vmul.f32 0.01, %v703_v27  ;;  %vm735_vm6 = vcmp.gt.f32.partialorder %v703_v27, 0.0 }
 0x149   : > { %v799_v33 = vsel %vm735_vm6, %v703_v27, %v767_v31 }
 0x14a   : > { %v831_v34 = vadd.f32 %v799_v33, %v641_v28  ;;  %v681_v36 = vpop.f32.mrf.mxu3 }
 0x14b   : > { %v847_v38 = vadd.f32 %v815_v3, %v681_v36 }
 0x14c   : > { %v555_v39 = vpop.f32.mrf.mxu0  ;;  %v855_v40 = vpack.c.bf16 %v831_v34, %v830_v57 }
 0x14d   : > { %v644_v42 = vpop.f32.mrf.mxu1  ;;  %v863_v43 = vpack.c.bf16 %v847_v38, %v846_v37  ;;  %v704_v44 = vadd.f32 %v1862_v4, %v555_v39 }
 0x14e   : > { %975 = vmatmul.bf16.gmra.mxu2 %v855_v40 }
 0x14f   : > { %1015 = vmatmul.bf16.gmra.mxu3 %v863_v43  ;;  %v768_v45 = vmul.f32 0.01, %v704_v44  ;;  %vm736_vm8 = vcmp.gt.f32.partialorder %v704_v44, 0.0 }
 0x151   : > { %v800_v25 = vsel %vm736_vm8, %v704_v44, %v768_v45 }
 0x152   : > { %v832_v35 = vadd.f32 %v800_v25, %v644_v42 }
 0x154   : > { %v557_v46 = vpop.f32.mrf.mxu0 }
 0x155   : > { %v705_v47 = vadd.f32 %v1862_v4, %v557_v46  ;;  %v646_v48 = vpop.f32.mrf.mxu1 }
 0x157   : > { %v769_v49 = vmul.f32 0.01, %v705_v47  ;;  %vm737_vm9 = vcmp.gt.f32.partialorder %v705_v47, 0.0 }
 0x159   : > { %v801_v50 = vsel %vm737_vm9, %v705_v47, %v769_v49 }
 0x15a   : > { %v833_v52 = vadd.f32 %v801_v50, %v646_v48 }
 0x15c   : > { %v560_v53 = vpop.f32.mrf.mxu0  ;;  %v856_v54 = vpack.c.bf16 %v833_v52, %v832_v35 }
 0x15d   : > { %v649_v55 = vpop.f32.mrf.mxu1  ;;  %v706_v56 = vadd.f32 %v1862_v4, %v560_v53 }
 0x15e   : > { %980 = vmatmul.bf16.gmra.mxu2 %v856_v54 }
 0x15f   : > { %v770_v59 = vmul.f32 0.01, %v706_v56  ;;  %vm738_vm10 = vcmp.gt.f32.partialorder %v706_v56, 0.0 }
 0x161   : > { %v941_v58 = vpop.f32.mrf.mxu2  ;;  %v802_v0 = vsel %vm738_vm10, %v706_v56, %v770_v59 }
 0x162   : > { %v834_v6 = vadd.f32 %v802_v0, %v649_v55  ;;  %v942_v7 = vadd.f32 %v1925_v63, %v941_v58 }
 0x164   : > { %v562_v60 = vpop.f32.mrf.mxu0 }
 0x165   : > { %v707_v61 = vadd.f32 %v1862_v4, %v562_v60  ;;  %v651_v62 = vpop.f32.mrf.mxu1 }
 0x167   : > { %v771_v1 = vmul.f32 0.01, %v707_v61  ;;  %vm739_vm11 = vcmp.gt.f32.partialorder %v707_v61, 0.0 }
 0x169   : > { %v803_v2 = vsel %vm739_vm11, %v707_v61, %v771_v1  ;;  %v943_v5 = vpop.f32.mrf.mxu2 }
 0x16a   : > { %v835_v8 = vadd.f32 %v803_v2, %v651_v62  ;;  %v944_v10 = vadd.f32 %v1925_v63, %v943_v5 }
 0x16c   : > { %v1392_v11 = vpack.c.bf16 %v944_v10, %v942_v7  ;;  %v565_v41 = vpop.f32.mrf.mxu0  ;;  %v857_v12 = vpack.c.bf16 %v835_v8, %v834_v6 }
 0x16d   : > { %v654_v13 = vpop.f32.mrf.mxu1  ;;  %v708_v51 = vadd.f32 %v1862_v4, %v565_v41 }
 0x16e   : > { %1393 = vst [vmem:[%s1932_s9] sm:$0xff] %v1392_v11   ;;  %985 = vmatmul.bf16.gmra.mxu2 %v857_v12 }
 0x16f   : > { %v772_v15 = vmul.f32 0.01, %v708_v51  ;;  %vm740_vm12 = vcmp.gt.f32.partialorder %v708_v51, 0.0 }
 0x171   : > { %v946_v14 = vpop.f32.mrf.mxu2  ;;  %v804_v20 = vsel %vm740_vm12, %v708_v51, %v772_v15 }
 0x172   : > { %v836_v9 = vadd.f32 %v804_v20, %v654_v13  ;;  %v947_v24 = vadd.f32 %v1925_v63, %v946_v14 }
 0x174   : > { %v567_v16 = vpop.f32.mrf.mxu0 }
 0x175   : > { %v709_v17 = vadd.f32 %v1862_v4, %v567_v16  ;;  %v656_v18 = vpop.f32.mrf.mxu1 }
 0x177   : > { %v773_v21 = vmul.f32 0.01, %v709_v17  ;;  %vm741_vm13 = vcmp.gt.f32.partialorder %v709_v17, 0.0 }
 0x179   : > { %v805_v22 = vsel %vm741_vm13, %v709_v17, %v773_v21  ;;  %v948_v23 = vpop.f32.mrf.mxu2 }
 0x17a   : > { %v837_v26 = vadd.f32 %v805_v22, %v656_v18  ;;  %v949_v19 = vadd.f32 %v1925_v63, %v948_v23 }
 0x17c   : > { %v1397_v27 = vpack.c.bf16 %v949_v19, %v947_v24  ;;  %v570_v28 = vpop.f32.mrf.mxu0  ;;  %v858_v29 = vpack.c.bf16 %v837_v26, %v836_v9 }
 0x17d   : > { %v710_v30 = vadd.f32 %v1862_v4, %v570_v28  ;;  %v659_v31 = vpop.f32.mrf.mxu1 }
 0x17e   : > { %1469 = vst [vmem:[%s1932_s9 + $0x8] sm:$0xff] %v1397_v27   ;;  %990 = vmatmul.bf16.gmra.mxu2 %v858_v29 }
 0x17f   : > { %v774_v33 = vmul.f32 0.01, %v710_v30  ;;  %vm742_vm14 = vcmp.gt.f32.partialorder %v710_v30, 0.0 }
 0x181   : > { %v951_v32 = vpop.f32.mrf.mxu2  ;;  %v806_v36 = vsel %vm742_vm14, %v710_v30, %v774_v33 }
 0x182   : > { %v838_v40 = vadd.f32 %v806_v36, %v659_v31  ;;  %v952_v42 = vadd.f32 %v1925_v63, %v951_v32 }
 0x184   : > { %v572_v57 = vpop.f32.mrf.mxu0 }
 0x185   : > { %v711_v34 = vadd.f32 %v1862_v4, %v572_v57  ;;  %v661_v37 = vpop.f32.mrf.mxu1 }
 0x187   : > { %v775_v3 = vmul.f32 0.01, %v711_v34  ;;  %vm743_vm15 = vcmp.gt.f32.partialorder %v711_v34, 0.0 }
 0x189   : > { %v807_v38 = vsel %vm743_vm15, %v711_v34, %v775_v3  ;;  %v953_v39 = vpop.f32.mrf.mxu2 }
 0x18a   : > { %v839_v43 = vadd.f32 %v807_v38, %v661_v37  ;;  %v954_v44 = vadd.f32 %v1925_v63, %v953_v39 }
 0x18c   : > { %v1402_v45 = vpack.c.bf16 %v954_v44, %v952_v42  ;;  %v859_v46 = vpack.c.bf16 %v839_v43, %v838_v40 }
 0x18e   : > { %1470 = vst [vmem:[%s1932_s9 + $0x10] sm:$0xff] %v1402_v45   ;;  %995 = vmatmul.bf16.gmra.mxu2 %v859_v46 }
 0x191   : > { %v956_v47 = vpop.f32.mrf.mxu2 }
 0x192   : > { %v957_v48 = vadd.f32 %v1925_v63, %v956_v47 }
 0x199   : > { %v958_v4 = vpop.f32.mrf.mxu2 }
 0x19a   : > { %v959_v25 = vadd.f32 %v1925_v63, %v958_v4 }
 0x19c   : > { %v1407_v49 = vpack.c.bf16 %v959_v25, %v957_v48 }
 0x19e   : > { %1471 = vst [vmem:[%s1932_s9 + $0x18] sm:$0xff] %v1407_v49  }
 0x1a1   : > { %v961_v50 = vpop.f32.mrf.mxu2 }
 0x1a2   : > { %v1001_v35 = vpop.f32.mrf.mxu3  ;;  %v962_v53 = vadd.f32 %v1925_v63, %v961_v50 }
 0x1a3   : > { %v1002_v56 = vadd.f32 %v1925_v63, %v1001_v35 }
 0x1a9   : > { %v963_v52 = vpop.f32.mrf.mxu2 }
 0x1aa   : > { %v964_v54 = vadd.f32 %v1925_v63, %v963_v52  ;;  %v1003_v55 = vpop.f32.mrf.mxu3 }
 0x1ab   : > { %v1004_v58 = vadd.f32 %v1925_v63, %v1003_v55 }
 0x1ac   : > { %v1412_v59 = vpack.c.bf16 %v964_v54, %v962_v53 }
 0x1ad   : > { %v1452_v60 = vpack.c.bf16 %v1004_v58, %v1002_v56 }
 0x1ae   : > { %1472 = vst [vmem:[%s1932_s9 + $0x20] sm:$0xff] %v1412_v59  }
 0x1af   : > { %1480 = vst [vmem:[%s1932_s9 + $0x60] sm:$0xff] %v1452_v60  }
 0x1b1   : > { %v966_v61 = vpop.f32.mrf.mxu2 }
 0x1b2   : > { %v1006_v62 = vpop.f32.mrf.mxu3  ;;  %v967_v1 = vadd.f32 %v1925_v63, %v966_v61 }
 0x1b3   : > { %v1007_v6 = vadd.f32 %v1925_v63, %v1006_v62 }
 0x1b9   : > { %v968_v0 = vpop.f32.mrf.mxu2 }
 0x1ba   : > { %v969_v2 = vadd.f32 %v1925_v63, %v968_v0  ;;  %v1008_v5 = vpop.f32.mrf.mxu3 }
 0x1bb   : > { %v1009_v7 = vadd.f32 %v1925_v63, %v1008_v5 }
 0x1bc   : > { %v1417_v8 = vpack.c.bf16 %v969_v2, %v967_v1 }
 0x1bd   : > { %v1457_v10 = vpack.c.bf16 %v1009_v7, %v1007_v6 }
 0x1be   : > { %1473 = vst [vmem:[%s1932_s9 + $0x28] sm:$0xff] %v1417_v8  }
 0x1bf   : > { %1481 = vst [vmem:[%s1932_s9 + $0x68] sm:$0xff] %v1457_v10  }
 0x1c1   : > { %v971_v11 = vpop.f32.mrf.mxu2 }
 0x1c2   : > { %v1011_v41 = vpop.f32.mrf.mxu3  ;;  %v972_v13 = vadd.f32 %v1925_v63, %v971_v11 }
 0x1c3   : > { %v1012_v15 = vadd.f32 %v1925_v63, %v1011_v41 }
 0x1c9   : > { %v973_v12 = vpop.f32.mrf.mxu2 }
 0x1ca   : > { %v974_v51 = vadd.f32 %v1925_v63, %v973_v12  ;;  %v1013_v14 = vpop.f32.mrf.mxu3 }
 0x1cb   : > { %v1014_v16 = vadd.f32 %v1925_v63, %v1013_v14 }
 0x1cc   : > { %v1422_v17 = vpack.c.bf16 %v974_v51, %v972_v13 }
 0x1cd   : > { %v1462_v18 = vpack.c.bf16 %v1014_v16, %v1012_v15 }
 0x1ce   : > { %1474 = vst [vmem:[%s1932_s9 + $0x30] sm:$0xff] %v1422_v17  }
 0x1cf   : > { %1482 = vst [vmem:[%s1932_s9 + $0x70] sm:$0xff] %v1462_v18  }
 0x1d1   : > { %v976_v20 = vpop.f32.mrf.mxu2 }
 0x1d2   : > { %v1016_v21 = vpop.f32.mrf.mxu3  ;;  %v977_v23 = vadd.f32 %v1925_v63, %v976_v20 }
 0x1d3   : > { %v1017_v26 = vadd.f32 %v1925_v63, %v1016_v21 }
 0x1d9   : > { %v978_v22 = vpop.f32.mrf.mxu2 }
 0x1da   : > { %v979_v9 = vadd.f32 %v1925_v63, %v978_v22  ;;  %v1018_v24 = vpop.f32.mrf.mxu3 }
 0x1db   : > { %v1019_v19 = vadd.f32 %v1925_v63, %v1018_v24 }
 0x1dc   : > { %v1427_v27 = vpack.c.bf16 %v979_v9, %v977_v23 }
 0x1dd   : > { %v1467_v28 = vpack.c.bf16 %v1019_v19, %v1017_v26 }
 0x1de   : > { %1475 = vst [vmem:[%s1932_s9 + $0x38] sm:$0xff] %v1427_v27  }
 0x1df   : > { %1483 = vst [vmem:[%s1932_s9 + $0x78] sm:$0xff] %v1467_v28  }
 0x1e1   : > { %v981_v29 = vpop.f32.mrf.mxu2 }
 0x1e2   : > { %v982_v31 = vadd.f32 %v1925_v63, %v981_v29 }
 0x1e9   : > { %v983_v30 = vpop.f32.mrf.mxu2 }
 0x1ea   : > { %v984_v32 = vadd.f32 %v1925_v63, %v983_v30 }
 0x1ec   : > { %v1432_v33 = vpack.c.bf16 %v984_v32, %v982_v31 }
 0x1ee   : > { %1476 = vst [vmem:[%s1932_s9 + $0x40] sm:$0xff] %v1432_v33  }
 0x1f1   : > { %v986_v57 = vpop.f32.mrf.mxu2 }
 0x1f2   : > { %v987_v36 = vadd.f32 %v1925_v63, %v986_v57 }
 0x1f9   : > { %v988_v34 = vpop.f32.mrf.mxu2 }
 0x1fa   : > { %v989_v3 = vadd.f32 %v1925_v63, %v988_v34 }
 0x1fc   : > { %v1437_v37 = vpack.c.bf16 %v989_v3, %v987_v36 }
 0x1fe   : > { %1477 = vst [vmem:[%s1932_s9 + $0x48] sm:$0xff] %v1437_v37  }
 0x201   : > { %v991_v38 = vpop.f32.mrf.mxu2 }
 0x202   : > { %v992_v40 = vadd.f32 %v1925_v63, %v991_v38 }
 0x209   : > { %v993_v39 = vpop.f32.mrf.mxu2 }
 0x20a   : > { %v994_v42 = vadd.f32 %v1925_v63, %v993_v39 }
 0x20c   : > { %v1442_v43 = vpack.c.bf16 %v994_v42, %v992_v40 }
 0x20e   : > { %1478 = vst [vmem:[%s1932_s9 + $0x50] sm:$0xff] %v1442_v43  }
 0x211   : > { %v996_v44 = vpop.f32.mrf.mxu2 }
 0x212   : > { %v997_v46 = vadd.f32 %v1925_v63, %v996_v44 }
 0x219   : > { %v998_v45 = vpop.f32.mrf.mxu2 }
 0x21a   : > { %v999_v47 = vadd.f32 %v1925_v63, %v998_v45 }
 0x21c   : > { %v1447_v4 = vpack.c.bf16 %v999_v47, %v997_v46 }
 0x21e   : > { %1479 = vst [vmem:[%s1932_s9 + $0x58] sm:$0xff] %v1447_v4  }
 0x21f PF: > { %s2007_s10 = smov %s1801_s18  ;;  %p16_p4 = scmp.ge.s32.totalorder %s1792_s15, 4  }
 0x220   : > { %s2008_s18 = smov %s1694_s19  ;;  %s2009_s19 = smov %s1698_s20 }
 0x221   : > { %s2010_s20 = smov %s2007_s10  ;;  %s2011_s21 = smov %s1792_s15 }
 0x222   :  { %18 = sbr.rel (!%p16_p4) target bundleno = 4 (0x4), region = 88 }
 0x227   :  { %1107 = vsyncpa [#allocation3], 1 }
 0x228   :  { %1109 = vsyncpa [#allocation3 + $0x1], 1 }
 0x229   :  { %1110 = vsyncpa [#allocation5], 1 }

</bundles_post_ra>
